<compile_context>
chip_gen: v7x
topology: tpu7x:2x2x1
jax: 0.10.0
libtpu: 0.0.40
codegen_flags: <defaults>
</compile_context>

<pallas_src>
import jax
import jax.numpy as jnp
from jax.experimental import pallas as pl
from jax.experimental.pallas import tpu as pltpu

_VMEM_BUDGET = 40 * 1024 * 1024   # data budget per grid step (fits v7x 64 MiB VMEM)
_VMEM_CAP = 48 * 1024 * 1024      # max scoped-VMEM limit requested


# --------------------------------------------------------------------------
# Kernels
# --------------------------------------------------------------------------
def _fused_kernel(f1_ref, f2_ref, w1a_ref, w1b_ref, b1_ref, w2t_ref, b2_ref,
                  out_ref):
    """Fully fused pool + MLP + softmax + weighted combine for TB batch elems.

    f1_ref / f2_ref / out_ref : (TB, C, HW)
    w1a_ref / w1b_ref         : (C, C)   pre-transposed halves of conv1 weight
    b1_ref                    : (1, C)   lane-dense conv1 bias
    w2t_ref                   : (C, 2)   pre-transposed conv2 weight
    b2_ref                    : (1, 2)   lane-dense conv2 bias
    """
    tb, c, hw = f1_ref.shape
    inv_hw = jnp.float32(1.0 / hw)

    # Global average pool (AdaptiveAvgPool2d(1)) over the lane (HW) axis.
    m1 = jnp.sum(f1_ref[...].astype(jnp.float32), axis=-1) * inv_hw   # (TB, C)
    m2 = jnp.sum(f2_ref[...].astype(jnp.float32), axis=-1) * inv_hw   # (TB, C)

    # 1x1 conv (2C -> C) + ReLU as a batched matmul (no N=1 matvec).
    h = (jnp.dot(m1, w1a_ref[...].astype(jnp.float32),
                 preferred_element_type=jnp.float32)
         + jnp.dot(m2, w1b_ref[...].astype(jnp.float32),
                   preferred_element_type=jnp.float32)
         + b1_ref[...].astype(jnp.float32))                           # (TB, C)
    h = jnp.maximum(h, 0.0)

    # 1x1 conv (C -> 2).
    logits = (jnp.dot(h, w2t_ref[...].astype(jnp.float32),
                      preferred_element_type=jnp.float32)
              + b2_ref[...].astype(jnp.float32))                      # (TB, 2)

    # 2-way softmax == sigmoid of the logit difference.
    d = logits[:, 1:2] - logits[:, 0:1]                               # (TB, 1)
    wa = 1.0 / (1.0 + jnp.exp(d))            # softmax channel 0
    wa = wa[:, :, None]                                               # (TB,1,1)
    wb = 1.0 - wa

    # Weighted combine; re-read inputs from VMEM near their use.
    out_ref[...] = (wa * f1_ref[...].astype(jnp.float32)
                    + wb * f2_ref[...].astype(jnp.float32)).astype(out_ref.dtype)


def _combine_kernel(w0_ref, w1_ref, f1_ref, f2_ref, out_ref):
    """Two-pass fallback: HW-tiled weighted combine; weights read from SMEM.

    w0_ref / w1_ref : (B,) f32 in SMEM
    f1_ref / f2_ref / out_ref : (1, C, THW)
    """
    b = pl.program_id(0)
    wa = w0_ref[b]
    wb = w1_ref[b]
    out_ref[...] = (wa * f1_ref[...].astype(jnp.float32)
                    + wb * f2_ref[...].astype(jnp.float32)).astype(out_ref.dtype)


# --------------------------------------------------------------------------
# Wrapper
# --------------------------------------------------------------------------
def _prep_params(conv1_w, conv1_b, conv2_w, conv2_b, C):
    w1 = conv1_w.reshape(C, 2 * C)
    w1a = w1[:, :C].T              # (C, C):  h += m1 @ w1a
    w1b = w1[:, C:].T              # (C, C):  h += m2 @ w1b
    b1 = conv1_b.reshape(1, C)     # lane-dense bias
    w2t = conv2_w.reshape(2, C).T  # (C, 2)
    b2 = conv2_b.reshape(1, 2)     # lane-dense bias
    return w1a, w1b, b1, w2t, b2


def dynamic_weight_module(f1, f2, conv1_w, conv1_b, conv2_w, conv2_b,
                          *, force_two_pass=False, combine_tile_bytes=2 << 20):
    """f1, f2: (B, C, H, W). Returns (B, C, H, W)."""
    B, C, H, W = f1.shape
    HW = H * W
    itemsize = jnp.dtype(f1.dtype).itemsize

    f1_flat = f1.reshape(B, C, HW)
    f2_flat = f2.reshape(B, C, HW)
    w1a, w1b, b1, w2t, b2 = _prep_params(conv1_w, conv1_b, conv2_w, conv2_b, C)

    per_elem = C * HW * itemsize                   # one (C, HW) feature-map slab
    weight_bytes = 2 * sum(int(x.size) * jnp.dtype(x.dtype).itemsize
                           for x in (w1a, w1b, b1, w2t, b2))  # double-buffered
    fused_fits = (6 * per_elem + weight_bytes) <= _VMEM_BUDGET

    if fused_fits and not force_two_pass:
        # -------- fused single pass: 1 read + 1 write per element ----------
        max_tb = max(1, (_VMEM_BUDGET - weight_bytes) // (6 * per_elem))
        tb = 1
        for cand in range(min(B, max_tb), 0, -1):
            if B % cand == 0:
                tb = cand
                break
        # Keep >= 2 parallel grid steps so both v7x TensorCores get work.
        if tb > 1 and B // tb < 2:
            for cand in range(tb // 2, 0, -1):
                if B % cand == 0:
                    tb = cand
                    break
        needed = 6 * tb * per_elem + weight_bytes
        vmem_limit = int(min(max(needed + (4 << 20), 16 << 20), _VMEM_CAP))

        out = pl.pallas_call(
            _fused_kernel,
            out_shape=jax.ShapeDtypeStruct((B, C, HW), f1.dtype),
            grid_spec=pltpu.PrefetchScalarGridSpec(
                num_scalar_prefetch=0,
                grid=(B // tb,),
                in_specs=[
                    pl.BlockSpec((tb, C, HW), lambda i: (i, 0, 0)),   # f1
                    pl.BlockSpec((tb, C, HW), lambda i: (i, 0, 0)),   # f2
                    pl.BlockSpec((C, C), lambda i: (0, 0)),           # w1a
                    pl.BlockSpec((C, C), lambda i: (0, 0)),           # w1b
                    pl.BlockSpec((1, C), lambda i: (0, 0)),           # b1
                    pl.BlockSpec((C, 2), lambda i: (0, 0)),           # w2t
                    pl.BlockSpec((1, 2), lambda i: (0, 0)),           # b2
                ],
                out_specs=pl.BlockSpec((tb, C, HW), lambda i: (i, 0, 0)),
            ),
            compiler_params=pltpu.CompilerParams(
                dimension_semantics=("parallel",),
                vmem_limit_bytes=vmem_limit),
        )(f1_flat, f2_flat, w1a, w1b, b1, w2t, b2)
        return out.reshape(B, C, H, W)

    # -------- two-pass fallback (large C*HW or forced) ----------------------
    # Tiny per-batch MLP + softmax in plain JAX (negligible work); the
    # bandwidth-heavy weighted combine is an HW-tiled Pallas kernel.
    # TODO(synk): move the pooling reduction into a Pallas kernel too if the
    # extra XLA read of f1/f2 ever dominates.
    m1 = jnp.mean(f1_flat.astype(jnp.float32), axis=-1)               # (B, C)
    m2 = jnp.mean(f2_flat.astype(jnp.float32), axis=-1)               # (B, C)
    h = jnp.maximum(m1 @ w1a.astype(jnp.float32)
                    + m2 @ w1b.astype(jnp.float32)
                    + b1.astype(jnp.float32), 0.0)                    # (B, C)
    logits = h @ w2t.astype(jnp.float32) + b2.astype(jnp.float32)     # (B, 2)
    d = logits[:, 1] - logits[:, 0]
    w0 = 1.0 / (1.0 + jnp.exp(d))        # softmax channel 0
    w1s = 1.0 - w0                       # softmax channel 1

    if C * HW * itemsize <= combine_tile_bytes or HW <= 128:
        thw = HW
    else:
        thw = max(128, (combine_tile_bytes // (C * itemsize)) // 128 * 128)
        thw = min(thw, (HW // 128) * 128)
    n_hw = pl.cdiv(HW, thw)
    needed = 6 * C * thw * itemsize
    vmem_limit = int(min(max(needed + (4 << 20), 16 << 20), _VMEM_CAP))

    out = pl.pallas_call(
        _combine_kernel,
        out_shape=jax.ShapeDtypeStruct((B, C, HW), f1.dtype),
        grid_spec=pltpu.PrefetchScalarGridSpec(
            num_scalar_prefetch=0,
            grid=(B, n_hw),
            in_specs=[
                pl.BlockSpec(memory_space=pltpu.MemorySpace.SMEM),    # w0 (B,)
                pl.BlockSpec(memory_space=pltpu.MemorySpace.SMEM),    # w1 (B,)
                pl.BlockSpec((1, C, thw), lambda b, t: (b, 0, t)),    # f1
                pl.BlockSpec((1, C, thw), lambda b, t: (b, 0, t)),    # f2
            ],
            out_specs=pl.BlockSpec((1, C, thw), lambda b, t: (b, 0, t)),
        ),
        compiler_params=pltpu.CompilerParams(
            dimension_semantics=("parallel", "parallel"),
            vmem_limit_bytes=vmem_limit),
    )(w0.astype(jnp.float32), w1s.astype(jnp.float32), f1_flat, f2_flat)
    return out.reshape(B, C, H, W)


# --------------------------------------------------------------------------
# Pure-JAX reference mirroring the PyTorch forward
# --------------------------------------------------------------------------
def _reference(f1, f2, conv1_w, conv1_b, conv2_w, conv2_b):
    B, C, H, W = f1.shape
    concat = jnp.concatenate([f1, f2], axis=1)                         # (B,2C,H,W)
    pooled = jnp.mean(concat, axis=(2, 3))                             # (B, 2C)
    h = jnp.maximum(pooled @ conv1_w.reshape(C, 2 * C).T + conv1_b, 0.0)
    logits = h @ conv2_w.reshape(2, C).T + conv2_b                     # (B, 2)
    w = jax.nn.softmax(logits, axis=1)
    wa = w[:, 0].reshape(B, 1, 1, 1)
    wb = w[:, 1].reshape(B, 1, 1, 1)
    return wa * f1 + wb * f2


if __name__ == "__main__":
    B, C, H, W = 2, 4, 16, 16
    key = jax.random.PRNGKey(0)
    k1, k2, k3, k4, k5, k6 = jax.random.split(key, 6)

    f1 = jax.random.normal(k1, (B, C, H, W), dtype=jnp.float32)
    f2 = jax.random.normal(k2, (B, C, H, W), dtype=jnp.float32)

    # Deterministic parameter init (shapes match nn.Conv2d(2C->C,1) / (C->2,1)).
    conv1_w = 0.1 * jax.random.normal(k3, (C, 2 * C, 1, 1), dtype=jnp.float32)
    conv1_b = 0.1 * jax.random.normal(k4, (C,), dtype=jnp.float32)
    conv2_w = 0.1 * jax.random.normal(k5, (2, C, 1, 1), dtype=jnp.float32)
    conv2_b = 0.1 * jax.random.normal(k6, (2,), dtype=jnp.float32)

    ref = _reference(f1, f2, conv1_w, conv1_b, conv2_w, conv2_b)

    # Path 1: fused single-pass kernel (default at these shapes).
    out_fused = jax.block_until_ready(
        dynamic_weight_module(f1, f2, conv1_w, conv1_b, conv2_w, conv2_b))
    assert out_fused.shape == (B, C, H, W)
    assert jnp.allclose(out_fused, ref, atol=1e-5, rtol=1e-5), "fused mismatch"

    # Path 2: two-pass HW-tiled combine (forced, with a tiny tile so the
    # multi-tile grid is exercised too).
    out_2p = jax.block_until_ready(
        dynamic_weight_module(f1, f2, conv1_w, conv1_b, conv2_w, conv2_b,
                              force_two_pass=True, combine_tile_bytes=2048))
    assert out_2p.shape == (B, C, H, W)
    assert jnp.allclose(out_2p, ref, atol=1e-5, rtol=1e-5), "two-pass mismatch"

    print("KERNEL_OK")
</pallas_src>

<mosaic_0001>
module attributes {stable_mosaic.version = 11 : i64} {
  func.func @_fused_kernel(%arg0: i32, %arg1: memref<1x4x256xf32, #tpu.memory_space<vmem>>, %arg2: memref<1x4x256xf32, #tpu.memory_space<vmem>>, %arg3: memref<4x4xf32, #tpu.memory_space<vmem>>, %arg4: memref<4x4xf32, #tpu.memory_space<vmem>>, %arg5: memref<1x4xf32, #tpu.memory_space<vmem>>, %arg6: memref<4x2xf32, #tpu.memory_space<vmem>>, %arg7: memref<1x2xf32, #tpu.memory_space<vmem>>, %arg8: memref<1x4x256xf32, #tpu.memory_space<vmem>>) attributes {dimension_semantics = [#tpu.dimension_semantics<parallel>], iteration_bounds = array<i64: 2>, scalar_prefetch = 0 : i64, scratch_operands = 0 : i64, tpu.core_type = #tpu.core_type<tc>, window_params = [{transform_indices = @transform_0, window_bounds = array<i64: 1, 4, 256>}, {transform_indices = @transform_1, window_bounds = array<i64: 1, 4, 256>}, {pipeline_mode = #tpu.pipeline_mode<synchronous>, transform_indices = @transform_2, window_bounds = array<i64: 4, 4>}, {pipeline_mode = #tpu.pipeline_mode<synchronous>, transform_indices = @transform_3, window_bounds = array<i64: 4, 4>}, {pipeline_mode = #tpu.pipeline_mode<synchronous>, transform_indices = @transform_4, window_bounds = array<i64: 1, 4>}, {pipeline_mode = #tpu.pipeline_mode<synchronous>, transform_indices = @transform_5, window_bounds = array<i64: 4, 2>}, {pipeline_mode = #tpu.pipeline_mode<synchronous>, transform_indices = @transform_6, window_bounds = array<i64: 1, 2>}, {transform_indices = @transform_7, window_bounds = array<i64: 1, 4, 256>}]} {
    %c0 = arith.constant 0 : index
    %c0_0 = arith.constant 0 : index
    %c0_1 = arith.constant 0 : index
    %0 = vector.load %arg1[%c0, %c0_0, %c0_1] : memref<1x4x256xf32, #tpu.memory_space<vmem>>, vector<1x4x256xf32>
    %cst = arith.constant dense<0.000000e+00> : vector<1x4xf32>
    %1 = vector.multi_reduction <add>, %0, %cst [2] : vector<1x4x256xf32> to vector<1x4xf32>
    %cst_2 = arith.constant 3.906250e-03 : f32
    %2 = vector.broadcast %cst_2 : f32 to vector<1x4xf32>
    %3 = arith.mulf %1, %2 : vector<1x4xf32>
    %c0_3 = arith.constant 0 : index
    %c0_4 = arith.constant 0 : index
    %c0_5 = arith.constant 0 : index
    %4 = vector.load %arg2[%c0_3, %c0_4, %c0_5] : memref<1x4x256xf32, #tpu.memory_space<vmem>>, vector<1x4x256xf32>
    %cst_6 = arith.constant dense<0.000000e+00> : vector<1x4xf32>
    %5 = vector.multi_reduction <add>, %4, %cst_6 [2] : vector<1x4x256xf32> to vector<1x4xf32>
    %cst_7 = arith.constant 3.906250e-03 : f32
    %6 = vector.broadcast %cst_7 : f32 to vector<1x4xf32>
    %7 = arith.mulf %5, %6 : vector<1x4xf32>
    %c0_8 = arith.constant 0 : index
    %c0_9 = arith.constant 0 : index
    %8 = vector.load %arg3[%c0_8, %c0_9] : memref<4x4xf32, #tpu.memory_space<vmem>>, vector<4x4xf32>
    %cst_10 = arith.constant dense<0.000000e+00> : vector<1x4xf32>
    %9 = tpu.matmul %3, %8, %cst_10 {dimension_numbers = #tpu.dot_dimension_numbers<[1], [0], [0], [1], [0, 0, 1, 1], [], []>} : vector<1x4xf32>, vector<4x4xf32>, vector<1x4xf32> -> vector<1x4xf32>
    %c0_11 = arith.constant 0 : index
    %c0_12 = arith.constant 0 : index
    %10 = vector.load %arg4[%c0_11, %c0_12] : memref<4x4xf32, #tpu.memory_space<vmem>>, vector<4x4xf32>
    %cst_13 = arith.constant dense<0.000000e+00> : vector<1x4xf32>
    %11 = tpu.matmul %7, %10, %cst_13 {dimension_numbers = #tpu.dot_dimension_numbers<[1], [0], [0], [1], [0, 0, 1, 1], [], []>} : vector<1x4xf32>, vector<4x4xf32>, vector<1x4xf32> -> vector<1x4xf32>
    %12 = arith.addf %9, %11 : vector<1x4xf32>
    %c0_14 = arith.constant 0 : index
    %c0_15 = arith.constant 0 : index
    %13 = vector.load %arg5[%c0_14, %c0_15] : memref<1x4xf32, #tpu.memory_space<vmem>>, vector<1x4xf32>
    %14 = arith.addf %12, %13 : vector<1x4xf32>
    %cst_16 = arith.constant 0.000000e+00 : f32
    %15 = vector.broadcast %cst_16 : f32 to vector<1x4xf32>
    %16 = arith.maximumf %14, %15 : vector<1x4xf32>
    %c0_17 = arith.constant 0 : index
    %c0_18 = arith.constant 0 : index
    %17 = vector.load %arg6[%c0_17, %c0_18] : memref<4x2xf32, #tpu.memory_space<vmem>>, vector<4x2xf32>
    %cst_19 = arith.constant dense<0.000000e+00> : vector<1x2xf32>
    %18 = tpu.matmul %16, %17, %cst_19 {dimension_numbers = #tpu.dot_dimension_numbers<[1], [0], [0], [1], [0, 0, 1, 1], [], []>} : vector<1x4xf32>, vector<4x2xf32>, vector<1x2xf32> -> vector<1x2xf32>
    %c0_20 = arith.constant 0 : index
    %c0_21 = arith.constant 0 : index
    %19 = vector.load %arg7[%c0_20, %c0_21] : memref<1x2xf32, #tpu.memory_space<vmem>>, vector<1x2xf32>
    %20 = arith.addf %18, %19 : vector<1x2xf32>
    %21 = vector.extract_strided_slice %20 {offsets = [0, 1], sizes = [1, 1], strides = [1, 1]} : vector<1x2xf32> to vector<1x1xf32>
    %22 = vector.extract_strided_slice %20 {offsets = [0, 0], sizes = [1, 1], strides = [1, 1]} : vector<1x2xf32> to vector<1x1xf32>
    %23 = arith.subf %21, %22 : vector<1x1xf32>
    %24 = math.exp %23 : vector<1x1xf32>
    %cst_22 = arith.constant 1.000000e+00 : f32
    %25 = vector.broadcast %cst_22 : f32 to vector<1x1xf32>
    %26 = arith.addf %25, %24 : vector<1x1xf32>
    %cst_23 = arith.constant 1.000000e+00 : f32
    %27 = vector.broadcast %cst_23 : f32 to vector<1x1xf32>
    %28 = arith.divf %27, %26 : vector<1x1xf32>
    %29 = vector.shape_cast %28 : vector<1x1xf32> to vector<1x1x1xf32>
    %cst_24 = arith.constant 1.000000e+00 : f32
    %30 = vector.broadcast %cst_24 : f32 to vector<1x1x1xf32>
    %31 = arith.subf %30, %29 : vector<1x1x1xf32>
    %c0_25 = arith.constant 0 : index
    %c0_26 = arith.constant 0 : index
    %c0_27 = arith.constant 0 : index
    %32 = vector.load %arg1[%c0_25, %c0_26, %c0_27] : memref<1x4x256xf32, #tpu.memory_space<vmem>>, vector<1x4x256xf32>
    %33 = vector.broadcast %29 : vector<1x1x1xf32> to vector<1x4x256xf32>
    %34 = arith.mulf %33, %32 : vector<1x4x256xf32>
    %c0_28 = arith.constant 0 : index
    %c0_29 = arith.constant 0 : index
    %c0_30 = arith.constant 0 : index
    %35 = vector.load %arg2[%c0_28, %c0_29, %c0_30] : memref<1x4x256xf32, #tpu.memory_space<vmem>>, vector<1x4x256xf32>
    %36 = vector.broadcast %31 : vector<1x1x1xf32> to vector<1x4x256xf32>
    %37 = arith.mulf %36, %35 : vector<1x4x256xf32>
    %38 = arith.addf %34, %37 : vector<1x4x256xf32>
    %c0_31 = arith.constant 0 : index
    %c0_32 = arith.constant 0 : index
    %c0_33 = arith.constant 0 : index
    %39 = vector.load %arg8[%c0_31, %c0_32, %c0_33] : memref<1x4x256xf32, #tpu.memory_space<vmem>>, vector<1x4x256xf32>
    tpu.vector_store %arg8[%c0_31, %c0_32, %c0_33], %38 {strides = array<i32>} : memref<1x4x256xf32, #tpu.memory_space<vmem>>, vector<1x4x256xf32>,
    return
  }
  func.func @transform_0(%arg0: i32) -> (i32, i32, i32) {
    %c0_i32 = arith.constant 0 : i32
    %c0_i32_0 = arith.constant 0 : i32
    %c0_i32_1 = arith.constant 0 : i32
    return %arg0, %c0_i32, %c0_i32_0 : i32, i32, i32
  }
  func.func @transform_1(%arg0: i32) -> (i32, i32, i32) {
    %c0_i32 = arith.constant 0 : i32
    %c0_i32_0 = arith.constant 0 : i32
    %c0_i32_1 = arith.constant 0 : i32
    return %arg0, %c0_i32, %c0_i32_0 : i32, i32, i32
  }
  func.func @transform_2(%arg0: i32) -> (i32, i32) {
    %c0_i32 = arith.constant 0 : i32
    %c0_i32_0 = arith.constant 0 : i32
    %c0_i32_1 = arith.constant 0 : i32
    return %c0_i32, %c0_i32_0 : i32, i32
  }
  func.func @transform_3(%arg0: i32) -> (i32, i32) {
    %c0_i32 = arith.constant 0 : i32
    %c0_i32_0 = arith.constant 0 : i32
    %c0_i32_1 = arith.constant 0 : i32
    return %c0_i32, %c0_i32_0 : i32, i32
  }
  func.func @transform_4(%arg0: i32) -> (i32, i32) {
    %c0_i32 = arith.constant 0 : i32
    %c0_i32_0 = arith.constant 0 : i32
    %c0_i32_1 = arith.constant 0 : i32
    return %c0_i32, %c0_i32_0 : i32, i32
  }
  func.func @transform_5(%arg0: i32) -> (i32, i32) {
    %c0_i32 = arith.constant 0 : i32
    %c0_i32_0 = arith.constant 0 : i32
    %c0_i32_1 = arith.constant 0 : i32
    return %c0_i32, %c0_i32_0 : i32, i32
  }
  func.func @transform_6(%arg0: i32) -> (i32, i32) {
    %c0_i32 = arith.constant 0 : i32
    %c0_i32_0 = arith.constant 0 : i32
    %c0_i32_1 = arith.constant 0 : i32
    return %c0_i32, %c0_i32_0 : i32, i32
  }
  func.func @transform_7(%arg0: i32) -> (i32, i32, i32) {
    %c0_i32 = arith.constant 0 : i32
    %c0_i32_0 = arith.constant 0 : i32
    %c0_i32_1 = arith.constant 0 : i32
    return %arg0, %c0_i32, %c0_i32_0 : i32, i32, i32
  }
}

</mosaic_0001>

<bundles_post_ra>
// kernel: tpu_custom_call.1
= control target key start
LH: loop header
LB: loop body
LE: loop exit
PB: predicated region body
PF: predicated region fallthrough
CT: control target
= control target key end

     0   :  { %s1281_s0 = inlined_call_operand.hbm [shape: f32[2,4,256], index: 0, kind: input, shape index: {}]   ;;  %s1282_s1 = inlined_call_operand.hbm [shape: f32[2,4,256], index: 1, kind: input, shape index: {}]   ;;  %s1283_s2 = inlined_call_operand.vmem [shape: f32[4,4], index: 2, kind: input, shape index: {}]   ;;  %s1284_s3 = inlined_call_operand.vmem [shape: f32[4,4], index: 3, kind: input, shape index: {}]   ;;  %s1285_s4 = inlined_call_operand.vmem [shape: f32[1,4], index: 4, kind: input, shape index: {}]   ;;  %s1286_s5 = inlined_call_operand.vmem [shape: f32[4,2], index: 5, kind: input, shape index: {}]   ;;  %s1287_s6 = inlined_call_operand.vmem [shape: f32[1,2], index: 6, kind: input, shape index: {}]   ;;  %s1288_s7 = inlined_call_operand.hbm [shape: f32[2,4,256], index: 7, kind: output, shape index: {}]  }
   0x1   :  { %1292 = sst [smem:[#allocation11_spill]] %s1281_s0 }
   0x2   :  { %12 = vsyncpa [#allocation3], 0 }
   0x3   :  { %14 = vsyncpa [#allocation3 + $0x1], 0 }
   0x4   :  { %15 = vsyncpa [#allocation6], 0 }
   0x5   :  { %17 = vsyncpa [#allocation6 + $0x1], 0 }
   0x6   :  { %18 = vsyncpa [#allocation4], 0 }
   0x7   :  { %20 = vsyncpa [#allocation4 + $0x1], 0  ;;  %s1027_s24 = smov 0   ;;  %s1029_s25 = smov 0  }
   0x8   :  { %s1031_s26 = smov 0   ;;  %s1033_s27 = smov 0  }
   0x9 LB: > { %s1048_s28 = sadd.s32 4294967295, %s978_s27   ;;  %s735_s29 = sadd.s32 4294967294, %s978_s27   ;;  %s978_s27 = sphi %s1033_s27, %s1311_s27   ;;  %s974_s26 = sphi %s1031_s26, %s1310_s26   ;;  %s970_s25 = sphi %s1029_s25, %s1309_s25   ;;  %s966_s24 = sphi %s1027_s24, %s1308_s24  }
   0xa   : > { %s1052_s30 = sadd.s32 1, %s978_s27   ;;  %s33_s8 = sadd.s32 1, %s974_s26 }
   0xb   : > { %s30_s9 = ssub.s32 %s978_s27, %s1052_s30  ;;  %p40_p0 = scmp.ne.s32.totalorder %s974_s26, %s970_s25 }
   0xc   : > { %p31_p1 = scmp.eq.s32.totalorder %s30_s9, 0  ;;  %p41_p2 = scmp.eq.s32.totalorder %s978_s27, 0 }
   0xd   : > { %p46_p3 = scmp.ne.s32.totalorder %s970_s25, %s966_s24  ;;  %p47_p4 = scmp.eq.s32.totalorder %s1048_s28, 0 }
   0xe   : > { %s1064_s10 = scalar_select %p31_p1, %s974_s26, %s33_s8  }
   0xf   : > { %p1066_p5 = por %p41_p2, %p40_p0  ;;  %p1070_p6 = por %p47_p4, %p46_p3 }
  0x10   : > { %p201_p7 = scmp.eq.s32.totalorder %s1048_s28, 1  ;;  %p207_p8 = scmp.eq.s32.totalorder %s735_s29, 1 }
  0x11   : > { %s1294_s12 = scalar_select %p1070_p6, 1, 0 }
  0x12   : > { %p804_p10 = scmp.lt.s32.totalorder %s978_s27, 2  ;;  %p1077_p11 = por %p201_p7, %p40_p0 }
  0x13   : > { %p1081_p12 = por %p207_p8, %p46_p3  ;;  %s1086_s15 = sand.u32 1, %s974_s26  }
  0x14   : > { %s1295_s13 = scalar_select %p1077_p11, 1, 0 }
  0x15   : > { %s1296_s14 = scalar_select %p1081_p12, 1, 0 }
  0x16   : > { %s759_s16 = sshll.u32 %s978_s27, 7  ;;  %s1289_s17 = sshll.u32 %s1086_s15, 3 }
  0x17   : > { %s1297_s0 = sld [smem:[#allocation11_spill]]  ;;  %s246_s21 = scalar_lea.vmem [#allocation2], %s1289_s17 }
  0x18   : > { %s254_s22 = sshll.u32 %s246_s21, 4  ;;  %p1101_p13 = pnand %p804_p10, %p1066_p5  ;;  %s1105_s22 = int_to_ptr.vmem [resolvable:$true] %s254_s22 }
  0x19   : > { %s243_s29 = scalar_lea.sflag [#allocation3], %s1086_s15 }
  0x1a   : > { %p850_p3 = pneg %p1101_p13 }
  0x1d   : > { %s1095_s20 = scalar_lea.hbm %s1297_s0, %s759_s16  ;;  %s853_s18 = scalar_lea.hbm %s1297_s0, 256 }
  0x1e   : > { %s848_s8 = scalar_lea.hbm %s1095_s20, 128  ;;  %p854_p5 = scmp.lt.u32.totalorder %s1095_s20, %s1297_s0 }
  0x1f   : > { %p849_p2 = scmp.ne.s32.totalorder %s1095_s20, %s848_s8  ;;  %p855_p8 = scmp.lt.u32.totalorder %s853_s18, %s848_s8 }
  0x20   : > { %p857_p9 = scmp.lt.u32.totalorder %s848_s8, %s1095_s20 }
  0x21   : > { %p851_p4 = pnand %p850_p3, %p849_p2  ;;  %p856_p10 = por %p855_p8, %p854_p5 }
  0x23   : > { %p852_p7 = pneg %p851_p4  ;;  %p858_p0 = por %p857_p9, %p856_p10 }
  0x25   : > { %p859_p1 = pnand %p858_p0, %p852_p7 }
  0x27   : > { %862 = shalt.err (!%p859_p1)
}
  0x28   : > { %s863_s17 = scalar_lea.vmem %s1105_s22, 128  ;;  %s980_s9 = smov [#allocation2]  }
  0x29   : > { %p864_p2 = scmp.ne.s32.totalorder %s1105_s22, %s863_s17  ;;  %s868_s11 = sshll.u32 %s980_s9, 4  ;;  %s869_s11 = int_to_ptr.vmem [resolvable:$false] %s868_s11 }
  0x2a   : > { %s870_s19 = scalar_lea.vmem %s869_s11, 256  ;;  %p871_p11 = scmp.lt.s32.totalorder %s1105_s22, %s869_s11 }
  0x2b   : > { %p866_p4 = pnand %p864_p2, %p850_p3  ;;  %p872_p5 = scmp.lt.s32.totalorder %s870_s19, %s863_s17 }
  0x2d   : > { %p867_p12 = pneg %p866_p4  ;;  %p873_p8 = por %p872_p5, %p871_p11 }
  0x2f   : > { %p874_p9 = pnand %p873_p8, %p867_p12 }
  0x31   : > { %877 = shalt.err (!%p874_p9)
}
  0x32   : > { %796 = dma.hbm_to_vmem [thread:$0]  (!%p1101_p13), %s1095_s20, 128, %s1105_s22, %s243_s29  }
  0x33   : > { %p1299_p0 = scmp.lt.s32.totalorder %s978_s27, 3  ;;  %p1300_p1 = scmp.ge.s32.totalorder %s978_s27, 1 }
  0x34   : > { %s1148_s21 = scalar_lea.hbm %s1282_s1, %s759_s16  ;;  %s1302_s9 = sshll.u32 %s1086_s15, 3 }
  0x35   : > { %p1139_p7 = pnand %p1300_p1, %p1299_p0  ;;  %s265_s11 = scalar_lea.vmem [#allocation5], %s1302_s9 }
  0x36   : > { %s273_s19 = sshll.u32 %s265_s11, 4  ;;  %s262_s20 = scalar_lea.sflag [#allocation6], %s1086_s15  ;;  %s274_s19 = int_to_ptr.vmem [resolvable:$true] %s273_s19 }
  0x37   : > { %s1301_s8 = scalar_select %p1139_p7, 1, 0 }
  0x38   : > { %s878_s22 = scalar_lea.hbm %s1148_s21, 128  ;;  %s883_s16 = scalar_lea.hbm %s1282_s1, 256 }
  0x39   : > { %p879_p11 = scmp.ne.s32.totalorder %s1148_s21, %s878_s22  ;;  %p884_p2 = scmp.lt.u32.totalorder %s1148_s21, %s1282_s1 }
  0x3a   : > { %p885_p4 = scmp.lt.u32.totalorder %s883_s16, %s878_s22  ;;  %p887_p8 = scmp.lt.u32.totalorder %s878_s22, %s1148_s21 }
  0x3b   : > { %p881_p12 = pnand %p879_p11, %p850_p3 }
  0x3c   : > { %p886_p5 = por %p885_p4, %p884_p2 }
  0x3d   : > { %p882_p10 = pneg %p881_p12 }
  0x3e   : > { %p888_p9 = por %p887_p8, %p886_p5 }
  0x40   : > { %p889_p0 = pnand %p888_p9, %p882_p10 }
  0x42   : > { %892 = shalt.err (!%p889_p0)
}
  0x43   : > { %s893_s15 = scalar_lea.vmem %s274_s19, 128  ;;  %s981_s9 = smov [#allocation5]  }
  0x44   : > { %p894_p1 = scmp.ne.s32.totalorder %s274_s19, %s893_s15  ;;  %s898_s0 = sshll.u32 %s981_s9, 4  ;;  %s899_s0 = int_to_ptr.vmem [resolvable:$false] %s898_s0 }
  0x45   : > { %s900_s11 = scalar_lea.vmem %s899_s0, 256  ;;  %p901_p6 = scmp.lt.s32.totalorder %s274_s19, %s899_s0 }
  0x46   : > { %p896_p11 = pnand %p894_p1, %p850_p3  ;;  %p902_p7 = scmp.lt.s32.totalorder %s900_s11, %s893_s15 }
  0x48   : > { %p897_p12 = pneg %p896_p11  ;;  %p903_p2 = por %p902_p7, %p901_p6 }
  0x4a   : > { %p904_p4 = pnand %p903_p2, %p897_p12 }
  0x4c   : > { %907 = shalt.err (!%p904_p4)
}
  0x4d   : > { %799 = dma.hbm_to_vmem [thread:$0]  (!%p1101_p13), %s1148_s21, 128, %s274_s19, %s262_s20  }
  0x4e   : > { %p1303_p10 = scmp.ne.s32.totalorder %s1301_s8, 0 }
  0x4f   : > { %s1175_s22 = sand.u32 (!%p1303_p10), 1, %s970_s25   ;;  %p1304_p6 = scmp.ne.s32.totalorder (!%p1303_p10), %s1294_s12, 0 }
  0x50   : > { %282 = sbr.rel (%p1303_p10) target bundleno = 1007 (0x3ef), region = 48  ;;  %s1178_s29 = sshll.u32 (!%p1303_p10), %s1175_s22, 3 }
  0x51   : > { %s285_s16 = scalar_lea.sflag (!%p1303_p10), [#allocation3], %s1175_s22  ;;  %s288_s17 = scalar_lea.vmem (!%p1303_p10), [#allocation2], %s1178_s29 }
  0x57   : > { %953 = dma.done.wait (%p1304_p6), %s285_s16, 128  }
  0x58   : > { %955 = vsyncadd (%p1304_p6), %s285_s16, 4294967168  ;;  %s294_s23 = scalar_lea.sflag [#allocation6], %s1175_s22  ;;  %s297_s8 = scalar_lea.vmem [#allocation5], %s1178_s29 }
  0x59   : > { %957 = dma.done.wait (%p1304_p6), %s294_s23, 128  }
  0x5a   : > { %959 = vsyncadd (%p1304_p6), %s294_s23, 4294967168  ;;  %vm337_vm0 = vcmask 1043456   ;;  %v1192_v0 = vld [vmem:[%s288_s17] sm:$0xff]  ;;  %v1194_v1 = vld [vmem:[%s297_s8] sm:$0xff]  ;;  %v982_v10 = vmov 0.0   ;;  %vm983_vm1 = vmmov 0   ;;  %v357_v13 = vlaneseq }
  0x5b   : > { %v335_v2 = vcombine.high %v1192_v0, %v1192_v0  ;;  %v338_v3 = vsel %vm337_vm0, %v1192_v0, 0.0  ;;  %v346_v4 = vcombine.high %v1194_v1, %v1194_v1  ;;  %v348_v6 = vsel %vm337_vm0, %v1194_v1, 0.0  ;;  %773 = vmatprep.subr.mxu1 %v982_v10  ;;  %v354_v11 = vld [vmem:[%s1283_s2] sm:$0xf]  ;;  %768 = vmatprep.subr.mxu0 %v982_v10  ;;  %s984_s17 = smov 1   ;;  %s985_s23 = smov 127  }
  0x5c   : > { %774 = vmatpush3.msk.msra.mxu1 %vm337_vm0, %v354_v11  ;;  %775 = vmatprep.mubr.msk.f32.mxu1 %vm983_vm1, %v982_v10  ;;  %v355_v12 = vld [vmem:[%s1284_s3] sm:$0xf]  ;;  %v358_v14 = vand.u32 127, %v357_v13  ;;  %v360_v15 = vshrl.u32 %v357_v13, 7  ;;  %vm363_vm2 = vcmask 31744   ;;  %s761_s21 = sshll.u32 %s1048_s28, 7 }
  0x5d   : > { %v339_v5 = vsel %vm337_vm0, %v335_v2, 0.0  ;;  %v349_v7 = vsel %vm337_vm0, %v346_v4, 0.0  ;;  %770 = vmatprep.mubr.msk.f32.mxu0 %vm983_vm1, %v982_v10  ;;  %769 = vmatpush3.msk.msra.mxu0 %vm337_vm0, %v355_v12  ;;  %v522_v23 = vld [vmem:[%s1286_s5] sm:$0xf]  ;;  %s332_s19 = scalar_lea.vmem [#allocation7], %s1178_s29  ;;  %s1237_s9 = scalar_lea.hbm %s1288_s7, %s761_s21 }
  0x5e   : > { %v340_v8 = vadd.f32 %v339_v5, %v338_v3  ;;  %v350_v9 = vadd.f32 %v349_v7, %v348_v6  ;;  %778 = vmatprep.subr.mxu0 %v982_v10  ;;  %v361_v16 = vsub.s32 %v358_v14, %v360_v15  ;;  %v519_v27 = vld [vmem:[%s1285_s4] sm:$0x1]  ;;  %s642_s20 = sshll.u32 %s332_s19, 4  ;;  %s628_s0 = scalar_lea.sflag [#allocation4], %s1175_s22  ;;  %s1239_s20 = int_to_ptr.vmem [resolvable:$true] %s642_s20 }
  0x5f   : > { %v523_v32 = vld [vmem:[%s1287_s6] sm:$0x1]  ;;  %s908_s28 = scalar_lea.vmem %s1239_s20, 128  ;;  %p1305_p3 = scmp.ne.s32.totalorder %s1295_s13, 0 }
  0x60   : > { %341 = vadd.xlane.f32.xlu0 %v340_v8  ;;  %p909_p13 = scmp.ne.s32.totalorder %s1239_s20, %s908_s28  ;;  %s986_s29 = smov [#allocation7]  }
  0x61   : > { %s912_s11 = sshll.u32 %s986_s29, 4  ;;  %s913_s11 = int_to_ptr.vmem [resolvable:$false] %s912_s11 }
  0x62   : > { %p910_p7 = pnand %p909_p13, %p1305_p3  ;;  %s914_s16 = scalar_lea.vmem %s913_s11, 256 }
  0x63   : > { %p915_p8 = scmp.lt.s32.totalorder %s1239_s20, %s913_s11  ;;  %p916_p9 = scmp.lt.s32.totalorder %s914_s16, %s908_s28 }
  0x64   : > { %351 = vadd.xlane.f32.xlu0 %v350_v9  ;;  %p911_p5 = pneg %p910_p7 }
  0x65   : > { %p917_p0 = por %p916_p9, %p915_p8 }
  0x67   : > { %p918_p1 = pnand %p917_p0, %p911_p5 }
  0xed   : > { %v342_v17 = vpop.xlane.xlu0 %341 }
  0xee   : > { %v343_v18 = vmul.f32 0.00390625, %v342_v17 }
  0xf0   : > { %v443_v19 = vrot.slane %v343_v18, %v361_v16 }
  0xf1   : > { %v352_v20 = vpop.xlane.xlu0 %351 }
  0xf2   : > { %v353_v21 = vmul.f32 0.00390625, %v352_v20  ;;  %776 = vmatmul.mubr.msk.f32.vlgmr.msra.gmra.mrb[0].mxu1 %vm363_vm2, %v443_v19 }
  0xf4   : > { %v362_v22 = vrot.slane %v353_v21, %v361_v16 }
  0xf6   : > { %771 = vmatmul.mubr.msk.f32.vlgmr.msra.gmra.mrb[0].mxu0 %vm363_vm2, %v362_v22 }
  0xf7   : > { %780 = vmatprep.mubr.msk.f32.mxu0 %vm983_vm1, %v982_v10  ;;  %779 = vmatpush3.msk.msra.mxu0 %vm337_vm0, %v522_v23 }
 0x1c5   : > { %v515_v24 = vpop.f32.mrb[0].mxu1 }
 0x1c6   : > { %v777_v25 = vpop.f32.mrb[1].mxu1 }
 0x1c9   : > { %v435_v26 = vpop.f32.mrb[0].mxu0 }
 0x1ca   : > { %v516_v28 = vadd.f32 %v515_v24, %v435_v26  ;;  %v772_v29 = vpop.f32.mrb[1].mxu0 }
 0x1cc   : > { %v520_v30 = vadd.f32 %v519_v27, %v516_v28 }
 0x1ce   : > { %v521_v31 = vmax.f32 %v520_v30, 0.0 }
 0x1d0   : > { %781 = vmatmul.mubr.msk.f32.vlgmr.msra.gmra.mrb[2].mxu0 %vm363_vm2, %v521_v31 }
 0x2a3   : > { %v596_v33 = vpop.f32.mrb[2].mxu0 }
 0x2a4   : > { %v597_v34 = vadd.f32 %v596_v33, %v523_v32  ;;  %v782_v35 = vpop.f32.mrb[3].mxu0 }
 0x2a6   : > { %601 = vrot.lane.b32.xlu1 %v597_v34, %s984_s17 }
 0x318   : > { %v602_v36 = vpop.permute.xlu1 %601 }
 0x319   : > { %v604_v37 = vsub.f32 %v597_v34, %v602_v36 }
 0x31b   : > { %v605_v38 = vmul.f32 1.442695, %v604_v37 }
 0x31d   : > { %844 = vpow2.f32 %v605_v38 }
 0x327   : > { %v845_v39 = vpop.eup %844 }
 0x328   : > { %v607_v40 = vadd.f32 1.0, %v845_v39 }
 0x32a   : > { %846 = vrcp.f32 %v607_v40 }
 0x334   : > { %v847_v41 = vpop.eup %846 }
 0x335   : > { %612 = vrot.lane.b32.xlu1 %v847_v41, %s985_s23  ;;  %v610_v42 = vsub.f32 1.0, %v847_v41 }
 0x337   : > { %619 = vrot.lane.b32.xlu0 %v610_v42, %s985_s23 }
 0x3a7   : > { %v613_v43 = vpop.permute.xlu1 %612 }
 0x3a8   : > { %783 = vpush %v613_v43 }
 0x3a9   : > { %v620_v44 = vpop.permute.xlu0 %619 }
 0x3aa   : > { %785 = vpush %v620_v44 }
 0x3d9   : > { %s784_s8 = spop %783 }
 0x3da   : > { %v615_v45 = vstv %s784_s8 }
 0x3db   : > { %s786_s12 = spop %785  ;;  %v617_v47 = vmul.f32 %v615_v45, %v1192_v0 }
 0x3dc   : > { %v622_v46 = vstv %s786_s12 }
 0x3dd   : > { %v624_v48 = vmul.f32 %v622_v46, %v1194_v1 }
 0x3df   : > { %v625_v49 = vadd.f32 %v624_v48, %v617_v47 }
 0x3e1   : > { %626 = vst [vmem:[%s332_s19] sm:$0xff] %v625_v49 }
 0x3e2   : > { %921 = shalt.err (!%p918_p1)
}
 0x3e3   : > { %s922_s22 = scalar_lea.hbm %s1237_s9, 128  ;;  %s926_s8 = scalar_lea.hbm %s1288_s7, 256 }
 0x3e4   : > { %p923_p11 = scmp.ne.s32.totalorder %s1237_s9, %s922_s22  ;;  %p927_p4 = scmp.lt.u32.totalorder %s1237_s9, %s1288_s7 }
 0x3e5   : > { %p928_p10 = scmp.lt.u32.totalorder %s926_s8, %s922_s22  ;;  %p930_p13 = scmp.lt.u32.totalorder %s922_s22, %s1237_s9 }
 0x3e6   : > { %p924_p12 = pnand %p923_p11, %p1305_p3 }
 0x3e7   : > { %p929_p6 = por %p928_p10, %p927_p4 }
 0x3e8   : > { %p925_p2 = pneg %p924_p12 }
 0x3e9   : > { %p931_p7 = por %p930_p13, %p929_p6 }
 0x3eb   : > { %p932_p5 = pnand %p931_p7, %p925_p2 }
 0x3ed   : > { %935 = shalt.err (!%p932_p5)
}
 0x3ee   : > { %791 = dma.vmem_to_hbm [thread:$0]  (%p1305_p3), %s1239_s20, 128, %s1237_s9, %s628_s0  }
 0x3ef PF: > { %s654_s19 = sand.u32 1, %s966_s24   ;;  %p1306_p8 = scmp.ne.s32.totalorder %s1296_s14, 0 }
 0x3f0   : > { %p1307_p9 = scmp.ge.s32.totalorder %s978_s27, 2  ;;  %s655_s18 = scalar_lea.sflag [#allocation4], %s654_s19 }
 0x3f2   : > { %p801_p0 = pnand %p1307_p9, %p1306_p8 }
 0x3f4   : > { %961 = dma.done.wait (!%p801_p0), %s655_s18, 128  }
 0x3f5   : > { %963 = vsyncadd (!%p801_p0), %s655_s18, 4294967168  ;;  %p23_p1 = scmp.ge.s32.totalorder %s1052_s30, 4   ;;  %s1308_s24 = smov %s970_s25 }
 0x3f6   : > { %s1309_s25 = smov %s974_s26  ;;  %s1310_s26 = smov %s1064_s10 }
 0x3f7   : > { %s1311_s27 = smov %s1052_s30  ;;  %25 = sbr.rel (!%p23_p1) target bundleno = 9 (0x9), region = 106 }
 0x3fe   :  { %660 = vsyncpa [#allocation3], 1 }
 0x3ff   :  { %662 = vsyncpa [#allocation3 + $0x1], 1 }
 0x400   :  { %663 = vsyncpa [#allocation6], 1 }
 0x401   :  { %665 = vsyncpa [#allocation6 + $0x1], 1 }
 0x402   :  { %666 = vsyncpa [#allocation4], 1 }
 0x403   :  { %668 = vsyncpa [#allocation4 + $0x1], 1 }

</bundles_post_ra>
